<compile_context>
chip_gen: v7x
topology: tpu7x:2x2x1
jax: 0.10.0
libtpu: 0.0.40
codegen_flags: <defaults>
</compile_context>

<pallas_src>
import functools

import jax
import jax.numpy as jnp
from jax.experimental import pallas as pl
from jax.experimental.pallas import tpu as pltpu


def _round_up(x, m):
    return ((x + m - 1) // m) * m


def _teacher_kernel(x_ref, w_ref, s_ref, o_ref, acc_ref, *, act, a, inv_sqrt_h):
    """Grid = (N tiles, h tiles).  One step = one (TILE_N, TILE_H) neuron tile.

    x_ref   : (TILE_N, d)       bf16 input tile (same tile across the h axis)
    w_ref   : (d, TILE_H)       bf16 normalized weights for this neuron tile
    s_ref   : (1, TILE_H)       f32 +/-1 readout signs (lane-dense row)
    o_ref   : (TILE_N, 1)       f32 output tile (written once, on the last h step)
    acc_ref : (TILE_N, TILE_H)  f32 lane-dense VMEM accumulator
    """
    j = pl.program_id(1)

    @pl.when(j == 0)
    def _():
        acc_ref[...] = jnp.zeros_like(acc_ref)

    # MXU: (TILE_N, d) @ (d, TILE_H) -> (TILE_N, TILE_H), f32 accumulation.
    o = jnp.dot(x_ref[...], w_ref[...], preferred_element_type=jnp.float32)

    if act == "relu":
        o = jnp.maximum(o, 0.0)
    elif act == "abs":
        o = jnp.abs(o)
    else:
        raise ValueError("Only ReLU and abs implemented as teacher activations!!")

    if a == 2:
        o = o * o                      # cheap VPU square, avoids integer_pow path
    elif a != 1:
        o = o ** a

    # VPU: lane-dense multiply-accumulate against the +/-1 signs (no MXU GEMV, no
    # narrow-lane stores in the hot loop).
    acc_ref[...] += o * s_ref[...]

    @pl.when(j == pl.num_programs(1) - 1)
    def _():
        # Single cross-lane (XLU) reduce + NTK scaling, only at the end of the reduction.
        o_ref[...] = (
            jnp.sum(acc_ref[...], axis=-1, keepdims=True) * inv_sqrt_h
        ).astype(o_ref.dtype)


def fc_teacher_forward(x, w1t, signs, h, *, act="relu", a=1,
                       tile_n=128, tile_h=1024, stream_dtype=jnp.bfloat16):
    """Pallas FCTeacher forward.

    x     : (N, d) float32 input
    w1t   : (d, h_used) float32, each column a unit-norm Gaussian weight row
            (h_used = (h // h_batch) * h_batch, i.e. residual neurons already dropped)
    signs : (h_used,) or (1, h_used) float32 of +/-1
    Returns (N,) float32 == FCTeacher(h, d).forward(x) with these weights/signs.
    """
    if act not in ("relu", "abs"):
        raise ValueError("Only ReLU and abs implemented as teacher activations!!")

    N, d = x.shape
    d2, h_used = w1t.shape
    assert d2 == d
    signs = jnp.reshape(signs, (1, -1)).astype(jnp.float32)
    assert signs.shape[1] == h_used

    # Tile sizes (N tile multiple of 8, h tile multiple of 128), then pad arrays to fit.
    tn = min(tile_n, _round_up(N, 8))
    th = min(tile_h, _round_up(h_used, 128))
    Np = _round_up(N, tn)
    Hp = _round_up(h_used, th)

    x_p = jnp.pad(x, ((0, Np - N), (0, 0))).astype(stream_dtype)
    w_p = jnp.pad(w1t, ((0, 0), (0, Hp - h_used))).astype(stream_dtype)
    s_p = jnp.pad(signs, ((0, 0), (0, Hp - h_used)))  # padded signs are 0 -> no contribution

    grid = (Np // tn, Hp // th)

    # Rough VMEM budget (double-buffered inputs/outputs + accumulator), capped for v7x.
    sbytes = jnp.dtype(stream_dtype).itemsize
    est = 2 * (tn * d * sbytes                    # x tile
               + _round_up(d, 8) * th * sbytes    # weight tile
               + 8 * th * 4                       # signs row (sublane-padded)
               + tn * 128 * 4)                    # output tile (lane-padded)
    est += tn * th * 4                            # f32 accumulator scratch
    vmem_limit = int(min(64 << 20, max(32 << 20, 2 * est)))

    kernel = functools.partial(
        _teacher_kernel, act=act, a=a, inv_sqrt_h=float(1.0 / (h ** 0.5))
    )

    out = pl.pallas_call(
        kernel,
        out_shape=jax.ShapeDtypeStruct((Np, 1), jnp.float32),
        grid_spec=pltpu.PrefetchScalarGridSpec(
            num_scalar_prefetch=0,
            grid=grid,  # (N tiles: parallel, h tiles: reduction)
            in_specs=[
                pl.BlockSpec((tn, d), lambda i, j: (i, 0)),   # x tile (constant along h)
                pl.BlockSpec((d, th), lambda i, j: (0, j)),   # weight tile
                pl.BlockSpec((1, th), lambda i, j: (0, j)),   # sign row
            ],
            out_specs=pl.BlockSpec((tn, 1), lambda i, j: (i, 0)),  # resident across h axis
            scratch_shapes=[pltpu.VMEM((tn, th), jnp.float32)],
        ),
        compiler_params=pltpu.CompilerParams(
            dimension_semantics=("parallel", "arbitrary"),
            vmem_limit_bytes=vmem_limit,
        ),
    )(x_p, w_p, s_p)
    return out[:N, 0]


def make_teacher_params(key, h, d, h_batch):
    """Deterministically build the random teacher weights/signs (plain JAX glue).

    Returns w1t (d, h_used) with unit-norm weight rows as columns, and signs (h_used,),
    where h_used = (h // h_batch) * h_batch (residual neurons dropped, as in PyTorch).
    """
    nb = h // h_batch
    kw, ks = jax.random.split(key)
    w1 = jax.random.normal(kw, (nb * h_batch, d), dtype=jnp.float32)
    w1 = w1 / jnp.linalg.norm(w1, axis=-1, keepdims=True)         # row-normalize
    w1t = jnp.transpose(w1)                                       # (d, h_used)
    signs = jnp.sign(jax.random.normal(ks, (nb * h_batch,), dtype=jnp.float32))
    return w1t, signs


def fc_teacher_reference(x, w1t, signs, h, *, act="relu", a=1):
    """Pure-JAX f32 reference mirroring the PyTorch forward."""
    o = x @ w1t
    o = jnp.maximum(o, 0.0) if act == "relu" else jnp.abs(o)
    o = o ** a
    return (o * signs[None, :]).sum(axis=-1) / (h ** 0.5)


if __name__ == "__main__":
    key = jax.random.PRNGKey(0)

    # Case 1: tile-friendly shapes, relu, a=1.  grid = (2 parallel, 2 reduction).
    N, d, h, h_batch = 128, 32, 1024, 256
    kx, kp, key = jax.random.split(key, 3)
    x = jax.random.normal(kx, (N, d), dtype=jnp.float32)
    w1t, signs = make_teacher_params(kp, h, d, h_batch)
    out = jax.block_until_ready(
        fc_teacher_forward(x, w1t, signs, h, act="relu", a=1, tile_n=64, tile_h=256))
    ref = fc_teacher_reference(x, w1t, signs, h, act="relu", a=1)
    assert out.shape == (N,)
    # bf16-streamed inputs vs f32 reference -> loosened tolerance.
    assert jnp.allclose(out, ref, atol=3e-2, rtol=3e-2), float(jnp.max(jnp.abs(out - ref)))

    # Case 2: ragged shapes (exercise padding paths), abs activation, a=2.
    N2, d2, h2, h_batch2 = 100, 24, 700, 192          # h_used = 3*192 = 576
    kx2, kp2 = jax.random.split(key)
    x2 = jax.random.normal(kx2, (N2, d2), dtype=jnp.float32)
    w1t2, signs2 = make_teacher_params(kp2, h2, d2, h_batch2)
    out2 = jax.block_until_ready(
        fc_teacher_forward(x2, w1t2, signs2, h2, act="abs", a=2, tile_n=64, tile_h=256))
    ref2 = fc_teacher_reference(x2, w1t2, signs2, h2, act="abs", a=2)
    assert out2.shape == (N2,)
    assert jnp.allclose(out2, ref2, atol=5e-2, rtol=5e-2), float(jnp.max(jnp.abs(out2 - ref2)))

    print("KERNEL_OK")
</pallas_src>

<mosaic_0001>
module attributes {stable_mosaic.version = 11 : i64} {
  func.func @_teacher_kernel(%arg0: i32, %arg1: i32, %arg2: memref<64x32xbf16, #tpu.memory_space<vmem>>, %arg3: memref<32x256xbf16, #tpu.memory_space<vmem>>, %arg4: memref<1x256xf32, #tpu.memory_space<vmem>>, %arg5: memref<64x1xf32, #tpu.memory_space<vmem>>, %arg6: memref<64x256xf32, #tpu.memory_space<vmem>>) attributes {dimension_semantics = [#tpu.dimension_semantics<parallel>, #tpu.dimension_semantics<arbitrary>], iteration_bounds = array<i64: 2, 4>, scalar_prefetch = 0 : i64, scratch_operands = 1 : i64, tpu.core_type = #tpu.core_type<tc>, window_params = [{transform_indices = @transform_0, window_bounds = array<i64: 64, 32>}, {transform_indices = @transform_1, window_bounds = array<i64: 32, 256>}, {transform_indices = @transform_2, window_bounds = array<i64: 1, 256>}, {transform_indices = @transform_3, window_bounds = array<i64: 64, 1>}]} {
    %c0_i32 = arith.constant 0 : i32
    %0 = arith.cmpi eq, %arg1, %c0_i32 : i32
    %1 = arith.extui %0 : i1 to i32
    %c0_i32_0 = arith.constant 0 : i32
    %2 = arith.cmpi ne, %1, %c0_i32_0 : i32
    scf.if %2 {
      %cst_12 = arith.constant 0.000000e+00 : f32
      %17 = vector.broadcast %cst_12 : f32 to vector<64x256xf32>
      %c0_13 = arith.constant 0 : index
      %c0_14 = arith.constant 0 : index
      %18 = vector.load %arg6[%c0_13, %c0_14] : memref<64x256xf32, #tpu.memory_space<vmem>>, vector<64x256xf32>
      tpu.vector_store %arg6[%c0_13, %c0_14], %17 {strides = array<i32>} : memref<64x256xf32, #tpu.memory_space<vmem>>, vector<64x256xf32>,
    } else {
    }
    %c0 = arith.constant 0 : index
    %c0_1 = arith.constant 0 : index
    %3 = vector.load %arg2[%c0, %c0_1] : memref<64x32xbf16, #tpu.memory_space<vmem>>, vector<64x32xbf16>
    %c0_2 = arith.constant 0 : index
    %c0_3 = arith.constant 0 : index
    %4 = vector.load %arg3[%c0_2, %c0_3] : memref<32x256xbf16, #tpu.memory_space<vmem>>, vector<32x256xbf16>
    %cst = arith.constant dense<0.000000e+00> : vector<64x256xf32>
    %5 = tpu.matmul %3, %4, %cst {dimension_numbers = #tpu.dot_dimension_numbers<[1], [0], [0], [1], [0, 0, 1, 1], [], []>} : vector<64x32xbf16>, vector<32x256xbf16>, vector<64x256xf32> -> vector<64x256xf32>
    %cst_4 = arith.constant 0.000000e+00 : f32
    %6 = vector.broadcast %cst_4 : f32 to vector<64x256xf32>
    %7 = arith.maximumf %5, %6 : vector<64x256xf32>
    %c0_5 = arith.constant 0 : index
    %c0_6 = arith.constant 0 : index
    %8 = vector.load %arg6[%c0_5, %c0_6] : memref<64x256xf32, #tpu.memory_space<vmem>>, vector<64x256xf32>
    %c0_7 = arith.constant 0 : index
    %c0_8 = arith.constant 0 : index
    %9 = vector.load %arg4[%c0_7, %c0_8] : memref<1x256xf32, #tpu.memory_space<vmem>>, vector<1x256xf32>
    %10 = vector.broadcast %9 : vector<1x256xf32> to vector<64x256xf32>
    %11 = arith.mulf %7, %10 : vector<64x256xf32>
    %12 = arith.addf %8, %11 : vector<64x256xf32>
    %c0_9 = arith.constant 0 : index
    %c0_10 = arith.constant 0 : index
    %13 = vector.load %arg6[%c0_9, %c0_10] : memref<64x256xf32, #tpu.memory_space<vmem>>, vector<64x256xf32>
    tpu.vector_store %arg6[%c0_9, %c0_10], %12 {strides = array<i32>} : memref<64x256xf32, #tpu.memory_space<vmem>>, vector<64x256xf32>,
    %c3_i32 = arith.constant 3 : i32
    %14 = arith.cmpi eq, %arg1, %c3_i32 : i32
    %15 = arith.extui %14 : i1 to i32
    %c0_i32_11 = arith.constant 0 : i32
    %16 = arith.cmpi ne, %15, %c0_i32_11 : i32
    scf.if %16 {
      %c0_12 = arith.constant 0 : index
      %c0_13 = arith.constant 0 : index
      %17 = vector.load %arg6[%c0_12, %c0_13] : memref<64x256xf32, #tpu.memory_space<vmem>>, vector<64x256xf32>
      %cst_14 = arith.constant dense<0.000000e+00> : vector<64xf32>
      %18 = vector.multi_reduction <add>, %17, %cst_14 [1] : vector<64x256xf32> to vector<64xf32>
      %19 = vector.shape_cast %18 : vector<64xf32> to vector<64x1xf32>
      %cst_15 = arith.constant 3.125000e-02 : f32
      %20 = vector.broadcast %cst_15 : f32 to vector<64x1xf32>
      %21 = arith.mulf %19, %20 : vector<64x1xf32>
      %c0_16 = arith.constant 0 : index
      %c0_17 = arith.constant 0 : index
      %22 = vector.load %arg5[%c0_16, %c0_17] : memref<64x1xf32, #tpu.memory_space<vmem>>, vector<64x1xf32>
      tpu.vector_store %arg5[%c0_16, %c0_17], %21 {strides = array<i32>} : memref<64x1xf32, #tpu.memory_space<vmem>>, vector<64x1xf32>,
    } else {
    }
    return
  }
  func.func @transform_0(%arg0: i32, %arg1: i32) -> (i32, i32) {
    %c0_i32 = arith.constant 0 : i32
    %c0_i32_0 = arith.constant 0 : i32
    return %arg0, %c0_i32 : i32, i32
  }
  func.func @transform_1(%arg0: i32, %arg1: i32) -> (i32, i32) {
    %c0_i32 = arith.constant 0 : i32
    %c0_i32_0 = arith.constant 0 : i32
    return %c0_i32, %arg1 : i32, i32
  }
  func.func @transform_2(%arg0: i32, %arg1: i32) -> (i32, i32) {
    %c0_i32 = arith.constant 0 : i32
    %c0_i32_0 = arith.constant 0 : i32
    return %c0_i32, %arg1 : i32, i32
  }
  func.func @transform_3(%arg0: i32, %arg1: i32) -> (i32, i32) {
    %c0_i32 = arith.constant 0 : i32
    %c0_i32_0 = arith.constant 0 : i32
    return %arg0, %c0_i32 : i32, i32
  }
}

</mosaic_0001>

<bundles_post_ra>
// kernel: tpu_custom_call.1
= control target key start
LH: loop header
LB: loop body
LE: loop exit
PB: predicated region body
PF: predicated region fallthrough
CT: control target
= control target key end

     0   :  { %8 = vsyncpa [#allocation4], 0  ;;  %s1115_s0 = inlined_call_operand.vmem [shape: bf16[128,32], index: 0, kind: input, shape index: {}]   ;;  %s1116_s1 = inlined_call_operand.hbm [shape: bf16[32,1024], index: 1, kind: input, shape index: {}]   ;;  %s1117_s2 = inlined_call_operand.vmem [shape: f32[1,1024], index: 2, kind: input, shape index: {}]   ;;  %s1118_s3 = inlined_call_operand.vmem [shape: f32[128,1], index: 3, kind: output, shape index: {}]  }
   0x1   :  { %10 = vsyncpa [#allocation4 + $0x1], 0  ;;  %s903_s12 = smov 0   ;;  %s905_s13 = smov 0  }
   0x2   :  { %s907_s14 = smov 0   ;;  %s909_s15 = smov 0  }
   0x3   :  { %s911_s16 = smov 0   ;;  %s913_s17 = smov 0  }
   0x4   :  { %s915_s18 = smov 0   ;;  %s917_s19 = smov 0  }
   0x5 LB: > { %s658_s20 = sadd.s32 4294967295, %s875_s19   ;;  %s25_s21 = sadd.s32 1, %s867_s17  ;;  %s875_s19 = sphi %s917_s19, %s16_s19   ;;  %s871_s18 = sphi %s915_s18, %s1129_s18   ;;  %s867_s17 = sphi %s913_s17, %s1128_s17   ;;  %s863_s16 = sphi %s911_s16, %s1127_s16   ;;  %s859_s15 = sphi %s909_s15, %s1126_s15   ;;  %s855_s14 = sphi %s907_s14, %s1125_s14   ;;  %s851_s13 = sphi %s905_s13, %s1124_s13   ;;  %s847_s12 = sphi %s903_s12, %s1123_s12  }
   0x6   : > { %p26_p0 = scmp.ge.s32.totalorder %s25_s21, 4  ;;  %s28_s22 = sadd.s32 1, %s871_s18 }
   0x7   : > { %s61_s23 = sadd.s32 1, %s855_s14  ;;  %p68_p1 = scmp.ne.s32.totalorder %s855_s14, %s851_s13 }
   0x8   : > { %s1131_s21 = smov (%p26_p0, %s25_s21), 0  ;;  %s1133_s22 = smov (!%p26_p0, %s28_s22), %s871_s18 }
   0x9   : > { %s58_s24 = ssub.s32 %s867_s17, %s1131_s21  ;;  %p69_p2 = scmp.eq.s32.totalorder %s875_s19, 0 }
   0xa   : > { %p30_p3 = scmp.ge.s32.totalorder %s1133_s22, 2  ;;  %p59_p4 = scmp.eq.s32.totalorder %s58_s24, 0 }
   0xb   : > { %p953_p5 = por %p69_p2, %p68_p1  ;;  %p74_p6 = scmp.ne.s32.totalorder %s851_s13, %s847_s12 }
   0xc   : > { %s1135_s22 = smov (%p30_p3, %s1133_s22), 0  ;;  %p75_p7 = scmp.eq.s32.totalorder %s658_s20, 0 }
   0xd   : > { %s961_s26 = scalar_select %p59_p4, %s855_s14, %s61_s23  }
   0xe   : > { %p699_p8 = scmp.lt.s32.totalorder %s875_s19, 8  ;;  %s159_s27 = sand.u32 1, %s855_s14  }
   0xf   : > { %p965_p9 = por %p75_p7, %p74_p6  ;;  %s662_s29 = sshll.u32 %s159_s27, 5 }
  0x10   : > { %s688_s30 = sshll.u32 %s867_s17, 7  ;;  %s163_s7 = scalar_lea.vmem [#allocation3], %s662_s29 }
  0x11   : > { %s973_s6 = scalar_lea.hbm %s1116_s1, %s688_s30  ;;  %s170_s8 = sshll.u32 %s163_s7, 4  ;;  %s981_s8 = int_to_ptr.vmem [resolvable:$true] %s170_s8 }
  0x12   : > { %p977_p10 = pnand %p699_p8, %p953_p5  ;;  %s984_s10 = scalar_lea.sflag [#allocation4], %s159_s27 }
  0x13   : > { %s779_s11 = scalar_lea.hbm %s973_s6, 512  ;;  %s784_s23 = scalar_lea.hbm %s1116_s1, 2048 }
  0x14   : > { %p780_p12 = scmp.ne.s32.totalorder %s973_s6, %s779_s11  ;;  %p781_p13 = pneg %p977_p10 }
  0x15   : > { %p785_p2 = scmp.lt.u32.totalorder %s973_s6, %s1116_s1  ;;  %p786_p3 = scmp.lt.u32.totalorder %s784_s23, %s779_s11 }
  0x16   : > { %p782_p0 = pnand %p781_p13, %p780_p12  ;;  %p788_p5 = scmp.lt.u32.totalorder %s779_s11, %s973_s6 }
  0x17   : > { %p787_p4 = por %p786_p3, %p785_p2 }
  0x18   : > { %p783_p1 = pneg %p782_p0 }
  0x19   : > { %p789_p6 = por %p788_p5, %p787_p4 }
  0x1b   : > { %p790_p7 = pnand %p789_p6, %p783_p1 }
  0x1d   : > { %793 = shalt.err (!%p790_p7)
}
  0x1e   : > { %s794_s27 = scalar_lea.vmem %s981_s8, 512  ;;  %s877_s29 = smov [#allocation3]  }
  0x1f   : > { %p795_p8 = scmp.ne.s32.totalorder %s981_s8, %s794_s27  ;;  %s799_s30 = sshll.u32 %s877_s29, 4  ;;  %s800_s30 = int_to_ptr.vmem [resolvable:$false] %s799_s30 }
  0x20   : > { %s801_s4 = scalar_lea.vmem %s800_s30, 1024  ;;  %p802_p11 = scmp.lt.s32.totalorder %s981_s8, %s800_s30 }
  0x21   : > { %p797_p12 = pnand %p795_p8, %p781_p13  ;;  %p803_p2 = scmp.lt.s32.totalorder %s801_s4, %s794_s27 }
  0x23   : > { %p798_p0 = pneg %p797_p12  ;;  %p804_p3 = por %p803_p2, %p802_p11 }
  0x25   : > { %p805_p4 = pnand %p804_p3, %p798_p0 }
  0x27   : > { %808 = shalt.err (!%p805_p4)
}
  0x28   : > { %s878_s5 = smov 512   ;;  %s879_s7 = smov 128  }
  0x29   : > { %s880_s11 = smov 8   ;;  %p186_p13 = scmp.lt.s32.totalorder %s875_s19, 9 }
  0x2a   : > { %698 = dma.hbm_to_vmem [thread:$0]  (!%p977_p10), %s973_s6, 512, %s981_s8, %s984_s10, %s878_s5, %s879_s7, %s880_s11  }
  0x2b   : > { %p1122_p1 = scmp.ge.s32.totalorder %s875_s19, 1 }
  0x2d   : > { %p187_p5 = pnand %p1122_p1, %p186_p13 }
  0x2e   : > { %s192_s12 = sand.u32 (!%p187_p5), 1, %s851_s13  }
  0x2f   : > { %190 = sbr.rel (%p187_p5) target bundleno = 472 (0x1d8), region = 32  ;;  %s666_s20 = sshll.u32 (!%p187_p5), %s192_s12, 5 }
  0x30   : > { %s193_s23 = scalar_lea.sflag (!%p187_p5), [#allocation4], %s192_s12  ;;  %s1016_s24 = scalar_lea.vmem (!%p187_p5), [#allocation3], %s666_s20 }
  0x36   : > { %842 = dma.done.wait (%p965_p9), %s193_s23, 512  }
  0x37   : > { %844 = vsyncadd (%p965_p9), %s193_s23, 4294966784  ;;  %s667_s9 = sshll.u32 %s863_s16, 3  ;;  %s669_s6 = sshll.u32 %s859_s15, 1 }
  0x38   : > { %p229_p10 = scmp.lt.s32.totalorder %s667_s9, 15  ;;  %p236_p11 = scmp.lt.s32.totalorder %s669_s6, 7 }
  0x39   : > { %p672_p9 = scmp.ne.s32.totalorder %s859_s15, 0 }
  0x3a   : > { %s1137_s9 = smov (!%p229_p10, %s667_s9), 15  ;;  %s1139_s6 = smov (!%p236_p11, %s669_s6), 7 }
  0x3b   : > { %s668_s8 = sshll.u32 %s1137_s9, 2  ;;  %s671_s10 = sshll.u32 %s1137_s9, 3  ;;  %v881_v0 = vmov (!%p672_p9), 0.0  }
  0x3c   : > { %s1029_s29 = scalar_lea.vmem %s1115_s0, %s668_s8  ;;  %s238_s4 = scalar_lea.vmem %s1117_s2, %s1139_s6  ;;  %251 = vst [vmem:[#allocation2] sm:$0xff] (!%p672_p9), %v881_v0  ;;  %252 = vst [vmem:[#allocation2 + $0x8] sm:$0xff] (!%p672_p9), %v881_v0 }
  0x3d   : > { %s1038_s7 = scalar_lea.vmem %s1118_s3, %s671_s10  ;;  %250 = sbr.rel (%p672_p9) target bundleno = 68 (0x44), region = 40  ;;  %253 = vst [vmem:[#allocation2 + $0x10] sm:$0xff] (!%p672_p9), %v881_v0  ;;  %254 = vst [vmem:[#allocation2 + $0x18] sm:$0xff] (!%p672_p9), %v881_v0 }
  0x3e   : > { %255 = vst [vmem:[#allocation2 + $0x20] sm:$0xff] (!%p672_p9), %v881_v0  ;;  %256 = vst [vmem:[#allocation2 + $0x28] sm:$0xff] (!%p672_p9), %v881_v0 }
  0x3f   : > { %257 = vst [vmem:[#allocation2 + $0x30] sm:$0xff] (!%p672_p9), %v881_v0  ;;  %258 = vst [vmem:[#allocation2 + $0x38] sm:$0xff] (!%p672_p9), %v881_v0 }
  0x40   : > { %259 = vst [vmem:[#allocation2 + $0x40] sm:$0xff] (!%p672_p9), %v881_v0  ;;  %260 = vst [vmem:[#allocation2 + $0x48] sm:$0xff] (!%p672_p9), %v881_v0 }
  0x41   : > { %261 = vst [vmem:[#allocation2 + $0x50] sm:$0xff] (!%p672_p9), %v881_v0  ;;  %262 = vst [vmem:[#allocation2 + $0x58] sm:$0xff] (!%p672_p9), %v881_v0 }
  0x42   : > { %263 = vst [vmem:[#allocation2 + $0x60] sm:$0xff] (!%p672_p9), %v881_v0  ;;  %264 = vst [vmem:[#allocation2 + $0x68] sm:$0xff] (!%p672_p9), %v881_v0 }
  0x43   : > { %265 = vst [vmem:[#allocation2 + $0x70] sm:$0xff] (!%p672_p9), %v881_v0  ;;  %266 = vst [vmem:[#allocation2 + $0x78] sm:$0xff] (!%p672_p9), %v881_v0 }
  0x44 PF: > { %v769_v1 = vld [vmem:[%s1016_s24 + $0x4] ss:$8 sps:$4 sm:$0xff]   ;;  %v771_v2 = vld [vmem:[%s1016_s24] ss:$8 sps:$4 sm:$0xff]   ;;  %v882_v3 = vmov 0   ;;  %v776_v7 = vld [vmem:[%s1029_s29 + $0x10] sm:$0xff]   ;;  %v439_v10 = vlaneseq }
  0x45   : > { %364 = vmatprep.mubr.bf16.mxu0 %v882_v3  ;;  %384 = vmatprep.mubr.bf16.mxu1 %v882_v3  ;;  %v772_v4 = vld [vmem:[%s1016_s24 + $0x14] ss:$8 sps:$4 sm:$0xff]   ;;  %v774_v5 = vld [vmem:[%s1016_s24 + $0x10] ss:$8 sps:$4 sm:$0xff]   ;;  %v775_v6 = vld [vmem:[%s1029_s29] sm:$0xff]   ;;  %vm319_vm0 = vcmask 261120  }
  0x46   : > { %332 = vmatprep.subr.bf16.mxu0 %v769_v1  ;;  %689 = vmatprep.subr.bf16.mxu1 %v769_v1  ;;  %v777_v8 = vld [vmem:[%s1029_s29 + $0x8] sm:$0xff]   ;;  %v778_v9 = vld [vmem:[%s1029_s29 + $0x18] sm:$0xff]   ;;  %v440_v11 = vshrl.u32 %v439_v10, 7  ;;  %v437_v13 = vld [vmem:[%s238_s4] sm:$0x3]  ;;  %p685_p6 = scmp.ne.s32.totalorder %s859_s15, 3 }
  0x47   : > { %333 = vmatpush1.bf16.msra.mxu0 %v771_v2  ;;  %691 = vmatpush1.bf16.msra.mxu1 %v771_v2  ;;  %v421_v23 = vld [vmem:[#allocation2] sm:$0xff]  ;;  %v422_v31 = vld [vmem:[#allocation2 + $0x8] sm:$0xff]  ;;  %v423_v39 = vld [vmem:[#allocation2 + $0x10] sm:$0xff]  ;;  %vm549_vm1 = vcmask (!%p685_p6), 7168  }
  0x48   : > { %334 = vmatprep.subr.bf16.mxu0 %v772_v4  ;;  %690 = vmatprep.subr.bf16.mxu1 %v772_v4  ;;  %v441_v12 = vsub.s32 0, %v440_v11  ;;  %v445_v14 = vsub.s32 1, %v440_v11  ;;  %v429_v24 = vld [vmem:[#allocation2 + $0x40] sm:$0xff]  ;;  %v430_v32 = vld [vmem:[#allocation2 + $0x48] sm:$0xff]  ;;  %v431_v40 = vld [vmem:[#allocation2 + $0x50] sm:$0xff] }
  0x49   : > { %v424_v47 = vld [vmem:[#allocation2 + $0x18] sm:$0xff]  ;;  %v425_v63 = vld [vmem:[#allocation2 + $0x20] sm:$0xff] }
  0x4a   : > { %v1054_v15 = vrot.slane %v437_v13, %v441_v12  ;;  %v1056_v18 = vrot.slane %v437_v13, %v445_v14  ;;  %v432_v48 = vld [vmem:[#allocation2 + $0x58] sm:$0xff]  ;;  %v433_v0 = vld [vmem:[#allocation2 + $0x60] sm:$0xff] }
  0x4b   : > { %335 = vmatpush1.bf16.msra.mxu0 %v774_v5  ;;  %692 = vmatpush1.bf16.msra.mxu1 %v774_v5 }
  0x4e   : > { %681 = vmatmul.mubr.msk.bf16.vlgmr.msra.gmra.mrb[0].mxu0 %vm319_vm0, %v775_v6  ;;  %683 = vmatmul.mubr.msk.bf16.vlgmr.msra.gmra.mrb[0].mxu1 %vm319_vm0, %v776_v7  ;;  %v426_v7 = vld [vmem:[#allocation2 + $0x28] sm:$0xff] }
  0x4f   : > { %374 = vmatprep.mubr.bf16.mxu0 %v882_v3  ;;  %394 = vmatprep.mubr.bf16.mxu1 %v882_v3 }
  0x56   : > { %682 = vmatmul.mubr.msk.bf16.gmra.mrb[4].mxu0 %vm319_vm0, %v777_v8  ;;  %684 = vmatmul.mubr.msk.bf16.gmra.mrb[4].mxu1 %vm319_vm0, %v778_v9  ;;  %v434_v8 = vld [vmem:[#allocation2 + $0x68] sm:$0xff] }
 0x121   : > { %v366_v16 = vpop.f32.mrb[0].mxu0  ;;  %v386_v17 = vpop.f32.mrb[0].mxu1 }
 0x122   : > { %v405_v19 = vmax.f32 %v366_v16, 0.0  ;;  %v413_v20 = vmax.f32 %v386_v17, 0.0  ;;  %v368_v21 = vpop.f32.mrb[1].mxu0  ;;  %v388_v22 = vpop.f32.mrb[1].mxu1  ;;  %v427_v16 = vld [vmem:[#allocation2 + $0x30] sm:$0xff] }
 0x123   : > { %v406_v25 = vmax.f32 %v368_v21, 0.0  ;;  %v414_v26 = vmax.f32 %v388_v22, 0.0  ;;  %v370_v27 = vpop.f32.mrb[2].mxu0  ;;  %v390_v28 = vpop.f32.mrb[2].mxu1  ;;  %v435_v17 = vld [vmem:[#allocation2 + $0x70] sm:$0xff] }
 0x124   : > { %v449_v29 = vmul.f32 %v1054_v15, %v405_v19  ;;  %v457_v30 = vmul.f32 %v1054_v15, %v413_v20  ;;  %v407_v33 = vmax.f32 %v370_v27, 0.0  ;;  %v415_v34 = vmax.f32 %v390_v28, 0.0  ;;  %v372_v35 = vpop.f32.mrb[3].mxu0  ;;  %v392_v36 = vpop.f32.mrb[3].mxu1 }
 0x125   : > { %v450_v37 = vmul.f32 %v1056_v18, %v406_v25  ;;  %v458_v38 = vmul.f32 %v1056_v18, %v414_v26  ;;  %v408_v41 = vmax.f32 %v372_v35, 0.0  ;;  %v416_v42 = vmax.f32 %v392_v36, 0.0  ;;  %v428_v25 = vld [vmem:[#allocation2 + $0x38] sm:$0xff] }
 0x126   : > { %v465_v43 = vadd.f32 %v449_v29, %v421_v23  ;;  %v473_v44 = vadd.f32 %v457_v30, %v429_v24  ;;  %v451_v45 = vmul.f32 %v1054_v15, %v407_v33  ;;  %v459_v46 = vmul.f32 %v1054_v15, %v415_v34  ;;  %v436_v26 = vld [vmem:[#allocation2 + $0x78] sm:$0xff] }
 0x127   : > { %v466_v49 = vadd.f32 %v450_v37, %v422_v31  ;;  %v474_v50 = vadd.f32 %v458_v38, %v430_v32  ;;  %v452_v51 = vmul.f32 %v1056_v18, %v408_v41  ;;  %v460_v52 = vmul.f32 %v1056_v18, %v416_v42 }
 0x128   : > { %481 = vst [vmem:[#allocation2] sm:$0xff] %v465_v43  ;;  %489 = vst [vmem:[#allocation2 + $0x40] sm:$0xff] %v473_v44  ;;  %v467_v53 = vadd.f32 %v451_v45, %v423_v39  ;;  %v475_v54 = vadd.f32 %v459_v46, %v431_v40 }
 0x129   : > { %482 = vst [vmem:[#allocation2 + $0x8] sm:$0xff] %v466_v49  ;;  %490 = vst [vmem:[#allocation2 + $0x48] sm:$0xff] %v474_v50  ;;  %v468_v55 = vadd.f32 %v452_v51, %v424_v47  ;;  %v476_v56 = vadd.f32 %v460_v52, %v432_v48  ;;  %v376_v57 = vpop.f32.mrb[4].mxu0  ;;  %v396_v58 = vpop.f32.mrb[4].mxu1 }
 0x12a   : > { %483 = vst [vmem:[#allocation2 + $0x10] sm:$0xff] %v467_v53  ;;  %491 = vst [vmem:[#allocation2 + $0x50] sm:$0xff] %v475_v54  ;;  %v409_v59 = vmax.f32 %v376_v57, 0.0  ;;  %v417_v60 = vmax.f32 %v396_v58, 0.0  ;;  %v378_v61 = vpop.f32.mrb[5].mxu0  ;;  %v398_v62 = vpop.f32.mrb[5].mxu1 }
 0x12b   : > { %484 = vst [vmem:[#allocation2 + $0x18] sm:$0xff] %v468_v55  ;;  %492 = vst [vmem:[#allocation2 + $0x58] sm:$0xff] %v476_v56  ;;  %v410_v1 = vmax.f32 %v378_v61, 0.0  ;;  %v418_v2 = vmax.f32 %v398_v62, 0.0  ;;  %v380_v3 = vpop.f32.mrb[6].mxu0  ;;  %v400_v4 = vpop.f32.mrb[6].mxu1 }
 0x12c   : > { %v453_v5 = vmul.f32 %v1054_v15, %v409_v59  ;;  %v461_v6 = vmul.f32 %v1054_v15, %v417_v60  ;;  %v411_v9 = vmax.f32 %v380_v3, 0.0  ;;  %v419_v10 = vmax.f32 %v400_v4, 0.0  ;;  %v382_v11 = vpop.f32.mrb[7].mxu0  ;;  %v402_v12 = vpop.f32.mrb[7].mxu1 }
 0x12d   : > { %v454_v13 = vmul.f32 %v1056_v18, %v410_v1  ;;  %v462_v14 = vmul.f32 %v1056_v18, %v418_v2  ;;  %v412_v19 = vmax.f32 %v382_v11, 0.0  ;;  %v420_v20 = vmax.f32 %v402_v12, 0.0  ;;  %500 = sbr.rel (%p685_p6) target bundleno = 472 (0x1d8), region = 44 }
 0x12e   : > { %v469_v21 = vadd.f32 %v453_v5, %v425_v63  ;;  %v477_v22 = vadd.f32 %v461_v6, %v433_v0  ;;  %v455_v23 = vmul.f32 %v1054_v15, %v411_v9  ;;  %v463_v24 = vmul.f32 %v1054_v15, %v419_v10 }
 0x12f   : > { %v470_v27 = vadd.f32 %v454_v13, %v426_v7  ;;  %v478_v28 = vadd.f32 %v462_v14, %v434_v8  ;;  %v456_v29 = vmul.f32 %v1056_v18, %v412_v19  ;;  %v464_v30 = vmul.f32 %v1056_v18, %v420_v20  ;;  %v501_v36 = vld [vmem:[#allocation2] sm:$0xff] (!%p685_p6) }
 0x130   : > { %485 = vst [vmem:[#allocation2 + $0x20] sm:$0xff] %v469_v21  ;;  %493 = vst [vmem:[#allocation2 + $0x60] sm:$0xff] %v477_v22  ;;  %v471_v31 = vadd.f32 %v455_v23, %v427_v16  ;;  %v479_v32 = vadd.f32 %v463_v24, %v435_v17  ;;  %v502_v18 = vld [vmem:[#allocation2 + $0x8] sm:$0xff] (!%p685_p6)  ;;  %v509_v47 = vld [vmem:[#allocation2 + $0x40] sm:$0xff] (!%p685_p6) }
 0x131   : > { %486 = vst [vmem:[#allocation2 + $0x28] sm:$0xff] %v470_v27  ;;  %494 = vst [vmem:[#allocation2 + $0x68] sm:$0xff] %v478_v28  ;;  %v472_v33 = vadd.f32 %v456_v29, %v428_v25  ;;  %v480_v34 = vadd.f32 %v464_v30, %v436_v26  ;;  %v517_v40 = vadd.f32 (!%p685_p6), %v502_v18, %v501_v36  ;;  %v503_v41 = vld [vmem:[#allocation2 + $0x10] sm:$0xff] (!%p685_p6)  ;;  %v510_v48 = vld [vmem:[#allocation2 + $0x48] sm:$0xff] (!%p685_p6) }
 0x132   : > { %487 = vst [vmem:[#allocation2 + $0x30] sm:$0xff] %v471_v31  ;;  %495 = vst [vmem:[#allocation2 + $0x70] sm:$0xff] %v479_v32  ;;  %v504_v42 = vld [vmem:[#allocation2 + $0x18] sm:$0xff] (!%p685_p6)  ;;  %v511_v45 = vld [vmem:[#allocation2 + $0x50] sm:$0xff] (!%p685_p6)  ;;  %v529_v50 = vadd.f32 (!%p685_p6), %v510_v48, %v509_v47 }
 0x133   : > { %488 = vst [vmem:[#allocation2 + $0x38] sm:$0xff] %v472_v33  ;;  %496 = vst [vmem:[#allocation2 + $0x78] sm:$0xff] %v480_v34  ;;  %518 = vadd.xlane.f32.xlu0 (!%p685_p6), %v517_v40  ;;  %v520_v44 = vadd.f32 (!%p685_p6), %v504_v42, %v503_v41  ;;  %v512_v46 = vld [vmem:[#allocation2 + $0x58] sm:$0xff] (!%p685_p6) }
 0x134   : > { %v532_v49 = vadd.f32 %v512_v46, %v511_v45 }
 0x137   : > { %v505_v15 = vld [vmem:[#allocation2 + $0x20] sm:$0xff]  ;;  %521 = vadd.xlane.f32.xlu0 %v520_v44 }
 0x138   : > { %v506_v35 = vld [vmem:[#allocation2 + $0x28] sm:$0xff]  ;;  %v513_v53 = vld [vmem:[#allocation2 + $0x60] sm:$0xff] }
 0x139   : > { %v523_v37 = vadd.f32 %v506_v35, %v505_v15  ;;  %v507_v38 = vld [vmem:[#allocation2 + $0x30] sm:$0xff]  ;;  %v514_v54 = vld [vmem:[#allocation2 + $0x68] sm:$0xff] }
 0x13a   : > { %v508_v39 = vld [vmem:[#allocation2 + $0x38] sm:$0xff]  ;;  %v515_v51 = vld [vmem:[#allocation2 + $0x70] sm:$0xff]  ;;  %v535_v56 = vadd.f32 %v514_v54, %v513_v53 }
 0x13b   : > { %524 = vadd.xlane.f32.xlu1 %v523_v37  ;;  %v526_v43 = vadd.f32 %v508_v39, %v507_v38  ;;  %v516_v52 = vld [vmem:[#allocation2 + $0x78] sm:$0xff]  ;;  %530 = vadd.xlane.f32.xlu0 %v529_v50 }
 0x13c   : > { %v538_v55 = vadd.f32 %v516_v52, %v515_v51 }
 0x13f   : > { %527 = vadd.xlane.f32.xlu1 %v526_v43  ;;  %536 = vadd.xlane.f32.xlu0 %v535_v56 }
 0x143   : > { %533 = vadd.xlane.f32.xlu1 %v532_v49 }
 0x147   : > { %539 = vadd.xlane.f32.xlu1 %v538_v55 }
 0x1c0   : > { %v519_v59 = vpop.xlane.xlu0 %518 }
 0x1c1   : > { %v541_v60 = vmul.f32 0.03125, %v519_v59 }
 0x1c3   : > { %550 = vst.msk [vmem:[%s1038_s7] sm:$0xff] %vm549_vm1, %v541_v60 }
 0x1c4   : > { %v522_v63 = vpop.xlane.xlu0 %521 }
 0x1c5   : > { %v542_v0 = vmul.f32 0.03125, %v522_v63 }
 0x1c7   : > { %551 = vst.msk [vmem:[%s1038_s7 + $0x8] sm:$0xff] %vm549_vm1, %v542_v0 }
 0x1c8   : > { %v525_v57 = vpop.xlane.xlu1 %524  ;;  %v531_v3 = vpop.xlane.xlu0 %530 }
 0x1c9   : > { %v543_v58 = vmul.f32 0.03125, %v525_v57  ;;  %v545_v4 = vmul.f32 0.03125, %v531_v3 }
 0x1cb   : > { %552 = vst.msk [vmem:[%s1038_s7 + $0x10] sm:$0xff] %vm549_vm1, %v543_v58  ;;  %554 = vst.msk [vmem:[%s1038_s7 + $0x20] sm:$0xff] %vm549_vm1, %v545_v4 }
 0x1cc   : > { %v528_v61 = vpop.xlane.xlu1 %527  ;;  %v537_v7 = vpop.xlane.xlu0 %536 }
 0x1cd   : > { %v544_v62 = vmul.f32 0.03125, %v528_v61  ;;  %v547_v8 = vmul.f32 0.03125, %v537_v7 }
 0x1cf   : > { %553 = vst.msk [vmem:[%s1038_s7 + $0x18] sm:$0xff] %vm549_vm1, %v544_v62  ;;  %556 = vst.msk [vmem:[%s1038_s7 + $0x30] sm:$0xff] %vm549_vm1, %v547_v8 }
 0x1d0   : > { %v534_v1 = vpop.xlane.xlu1 %533 }
 0x1d1   : > { %v546_v2 = vmul.f32 0.03125, %v534_v1 }
 0x1d3   : > { %555 = vst.msk [vmem:[%s1038_s7 + $0x28] sm:$0xff] %vm549_vm1, %v546_v2 }
 0x1d4   : > { %v540_v5 = vpop.xlane.xlu1 %539 }
 0x1d5   : > { %v548_v6 = vmul.f32 0.03125, %v540_v5 }
 0x1d7   : > { %557 = vst.msk [vmem:[%s1038_s7 + $0x38] sm:$0xff] %vm549_vm1, %v548_v6 }
 0x1d8 PF: > { %s16_s19 = sadd.s32 1, %s875_s19   ;;  %s1123_s12 = smov %s851_s13 }
 0x1d9   : > { %p13_p7 = scmp.ge.s32.totalorder %s16_s19, 10   ;;  %s1124_s13 = smov %s855_s14 }
 0x1da   : > { %s1125_s14 = smov %s961_s26  ;;  %s1126_s15 = smov %s867_s17 }
 0x1db   : > { %s1127_s16 = smov %s871_s18  ;;  %s1128_s17 = smov %s1131_s21 }
 0x1dc   : > { %s1129_s18 = smov %s1135_s22  ;;  %15 = sbr.rel (!%p13_p7) target bundleno = 5 (0x5), region = 86 }
 0x1e3   :  { %580 = vsyncpa [#allocation4], 1 }
 0x1e4   :  { %582 = vsyncpa [#allocation4 + $0x1], 1 }

</bundles_post_ra>
